<compile_context>
chip_gen: v5e
topology: v5e:2x2
jax: 0.10.0
libtpu: 0.0.40
codegen_flags: <defaults>
</compile_context>

<pallas_src>
import functools

import jax
import jax.numpy as jnp
from jax import lax
from jax.experimental import pallas as pl
from jax.experimental.pallas import tpu as pltpu

_EPS = 1e-8  # PyTorch F.cosine_similarity default eps


def _round_up(x, m):
    return -(-x // m) * m


def _vmem_capacity_bytes():
    """Physical per-core VMEM (128 MiB on v5e/v6e, 64 MiB on v7x)."""
    try:
        info = pltpu.get_tpu_info()
        cap = int(getattr(info, "vmem_capacity_bytes", 0))
        if cap > 0:
            return cap
    except Exception:
        pass
    return 64 * 1024 * 1024  # conservative default (v7x per-core VMEM)


def _default_num_core_splits():
    """2 on chips whose Pallas device exposes 2 TensorCores, else 1."""
    try:
        kind = jax.devices()[0].device_kind.lower()
    except Exception:
        return 1
    if any(tag in kind for tag in ("v4", "v5p", "7")):
        return 2
    return 1


def _wcel_kernel(x1_ref, x2_ref, tgt_ref, acc_ref, *, margin, n_rows, tile_n,
                 sub_n, bps, guard_dup):
    # acc_ref: (8, 128) f32 block, resident across the reduction axis.
    # Sublane rows 0..3 hold [pos_sum, pos_cnt, neg_sum, neg_cnt] broadcast
    # across all 128 lanes (lane-dense -> unmasked vector stores).
    c = pl.program_id(0)
    i = pl.program_id(1)

    @pl.when(i == 0)
    def _():
        acc_ref[...] = jnp.zeros_like(acc_ref)

    block_id = c * bps + i
    row0 = block_id * tile_n
    row_sel = lax.broadcasted_iota(jnp.int32, acc_ref.shape, 0)   # hoisted
    local = lax.broadcasted_iota(jnp.int32, (sub_n, 1), 0)        # hoisted

    def accumulate():
        def body(j, carry):
            s = pl.multiple_of(j * sub_n, sub_n)
            x1 = x1_ref[pl.ds(s, sub_n), :].astype(jnp.float32)
            x2 = x2_ref[pl.ds(s, sub_n), :].astype(jnp.float32)
            # Lane-axis (XLU) reductions.  This kernel is HBM-bound; move these
            # to the idle MXU (dot against ones) only if a bundle dump shows
            # the XLU slot binding.
            dot = jnp.sum(x1 * x2, axis=-1, keepdims=True)        # (sub_n, 1)
            sq1 = jnp.sum(x1 * x1, axis=-1, keepdims=True)
            sq2 = jnp.sum(x2 * x2, axis=-1, keepdims=True)
            # PyTorch eps semantics: cos = dot / max(||x1||*||x2||, eps);
            # sqrt(max(sq1*sq2, eps^2)) == max(sqrt(sq1*sq2), eps); one EUP rsqrt.
            cos = dot * lax.rsqrt(jnp.maximum(sq1 * sq2, _EPS * _EPS))

            tgt = tgt_ref[pl.ds(s, sub_n), :]                      # (sub_n, 1) i32
            valid = (row0 + s + local) < n_rows                    # ragged tail mask
            pos = valid & (tgt == 1)
            neg = valid & (tgt == -1)
            # Select, not multiply-by-mask: OOB tail rows may hold garbage/NaN.
            pos_loss = jnp.where(pos, 1.0 - cos, 0.0)
            neg_loss = jnp.where(neg, jnp.maximum(cos - margin, 0.0), 0.0)

            ps = jnp.sum(pos_loss)
            pc = jnp.sum(pos.astype(jnp.float32))
            ns = jnp.sum(neg_loss)
            nc = jnp.sum(neg.astype(jnp.float32))
            acc_ref[...] += (jnp.where(row_sel == 0, ps, 0.0)
                             + jnp.where(row_sel == 1, pc, 0.0)
                             + jnp.where(row_sel == 2, ns, 0.0)
                             + jnp.where(row_sel == 3, nc, 0.0))
            return carry

        lax.fori_loop(0, tile_n // sub_n, body, 0)

    if guard_dup:
        # Core split did not divide the block count evenly: duplicate trailing
        # grid steps re-read the (clamped) last block; skip their accumulation.
        pl.when(row0 < n_rows)(accumulate)
    else:
        accumulate()


def weighted_cosine_embedding_loss(x1, x2, target, *, margin=0.5,
                                   negative_weight=3.0, tile_n=None,
                                   num_core_splits=None):
    x1 = jnp.asarray(x1)
    x2 = jnp.asarray(x2)
    n, d = x1.shape
    assert x2.shape == (n, d)
    if n == 0:
        return jnp.float32(0.0)

    # Keep native input dtype (bf16 halves HBM traffic); cast inside kernel.
    itemsize = max(jnp.dtype(x1.dtype).itemsize, jnp.dtype(x2.dtype).itemsize)
    align = {4: 8, 2: 16, 1: 32}.get(itemsize, 8)

    # ---- Per-generation VMEM sizing (v5e/v6e: 128 MiB, v7x: 64 MiB). ----
    vmem_cap = _vmem_capacity_bytes()
    vmem_limit = max(32 << 20, vmem_cap - (16 << 20))   # headroom for Mosaic scratch

    # Sub-chunk rows: bound the live f32 temporaries (~6 arrays of (sub_n, d)).
    sub_temp_budget = 6 << 20
    per_row_tmp = 6 * d * 4
    sub_n = min(1024, max(align, (sub_temp_budget // per_row_tmp) // align * align))
    sub_n = min(sub_n, max(align, _round_up(n, align)))  # no bigger than batch

    # DMA block rows: fill remaining VMEM with double-buffered x1/x2 (+ the
    # (tile_n, 1) int32 target block, which costs 512 B/row/buffer in VMEM).
    per_row_block = 2 * 2 * d * itemsize + 2 * 512
    input_budget = max(4 << 20, vmem_limit - sub_temp_budget - (12 << 20))
    max_tile = max(sub_n, (input_budget // per_row_block) // sub_n * sub_n)
    if tile_n is None:
        tile_n = max_tile
    else:
        tile_n = max(sub_n, (min(int(tile_n), max_tile) // sub_n) * sub_n)
    tile_n = min(tile_n, _round_up(n, sub_n))            # shrink for small batches

    # ---- Grid: (core split, batch tiles). No HBM padding of x1/x2; the
    # ragged tail block is masked in-kernel. ----
    if num_core_splits is None:
        num_core_splits = _default_num_core_splits()
    total_blocks = -(-n // tile_n)
    num_core_splits = max(1, min(int(num_core_splits), total_blocks))
    bps = -(-total_blocks // num_core_splits)            # blocks per split
    guard_dup = num_core_splits * bps > total_blocks

    def blk_index(c, i):
        b = c * bps + i
        if guard_dup:
            b = jnp.minimum(b, total_blocks - 1)         # keep DMA in bounds
        return (b, 0)

    tgt2d = jnp.asarray(target).reshape(n, 1).astype(jnp.int32)

    kernel = functools.partial(_wcel_kernel, margin=float(margin), n_rows=n,
                               tile_n=tile_n, sub_n=sub_n, bps=bps,
                               guard_dup=guard_dup)

    acc = pl.pallas_call(
        kernel,
        out_shape=jax.ShapeDtypeStruct((num_core_splits * 8, 128), jnp.float32),
        grid_spec=pltpu.PrefetchScalarGridSpec(
            num_scalar_prefetch=0,
            grid=(num_core_splits, bps),
            in_specs=[
                pl.BlockSpec((tile_n, d), blk_index),
                pl.BlockSpec((tile_n, d), blk_index),
                pl.BlockSpec((tile_n, 1), blk_index),
            ],
            out_specs=pl.BlockSpec((8, 128), lambda c, i: (c, 0)),
        ),
        compiler_params=pltpu.CompilerParams(
            dimension_semantics=("parallel", "arbitrary"),
            vmem_limit_bytes=int(vmem_limit),
        ),
    )(x1, x2, tgt2d)

    # (num_core_splits, 8) partials live at lane 0; rows 0..3 = ps, pc, ns, nc.
    partials = acc.reshape(num_core_splits, 8, 128)[:, :, 0]
    totals = jnp.sum(partials, axis=0)
    ps, pc, ns, nc = totals[0], totals[1], totals[2], totals[3]

    pos_mean = ps / jnp.maximum(pc, 1.0)
    neg_mean = ns / jnp.maximum(nc, 1.0)
    w = jnp.float32(negative_weight)

    # Mirrors the PyTorch if/elif branching on the (data-dependent) counts.
    return jnp.where(
        (pc > 0) & (nc > 0),
        0.5 * (pos_mean + w * neg_mean),
        jnp.where(pc > 0, pos_mean,
                  jnp.where(nc > 0, w * neg_mean, jnp.float32(0.0))))


def _reference(x1, x2, target, margin=0.5, negative_weight=3.0):
    x1 = x1.astype(jnp.float32)
    x2 = x2.astype(jnp.float32)
    dot = jnp.sum(x1 * x2, axis=1)
    sq1 = jnp.sum(x1 * x1, axis=1)
    sq2 = jnp.sum(x2 * x2, axis=1)
    cos = dot / jnp.maximum(jnp.sqrt(sq1 * sq2), _EPS)
    pos = (target == 1).astype(jnp.float32)
    neg = (target == -1).astype(jnp.float32)
    pc = jnp.sum(pos)
    nc = jnp.sum(neg)
    pos_mean = jnp.sum((1.0 - cos) * pos) / jnp.maximum(pc, 1.0)
    neg_mean = jnp.sum(jnp.maximum(cos - margin, 0.0) * neg) / jnp.maximum(nc, 1.0)
    return jnp.where(
        (pc > 0) & (nc > 0),
        0.5 * (pos_mean + negative_weight * neg_mean),
        jnp.where(pc > 0, pos_mean,
                  jnp.where(nc > 0, negative_weight * neg_mean, 0.0)))


if __name__ == "__main__":
    # Module __init__ has no learnable parameters; margin / negative_weight
    # are fixed hyperparameters set deterministically below.
    margin = 0.5
    negative_weight = 3.0

    N, D = 16, 128
    key = jax.random.PRNGKey(0)
    k1, k2 = jax.random.split(key)
    x1 = jax.random.normal(k1, (N, D), dtype=jnp.float32)
    x2 = jax.random.normal(k2, (N, D), dtype=jnp.float32)
    # Deterministic mix of positive (+1) and negative (-1) pairs.
    target = jnp.where(jnp.arange(N) % 3 == 0, -1, 1).astype(jnp.int32)

    loss = weighted_cosine_embedding_loss(
        x1, x2, target, margin=margin, negative_weight=negative_weight)
    loss = jax.block_until_ready(loss)

    ref = _reference(x1, x2, target, margin=margin,
                     negative_weight=negative_weight)
    assert jnp.allclose(loss, ref, atol=1e-4, rtol=1e-4), (loss, ref)

    print("KERNEL_OK")
</pallas_src>

<mosaic_0001>
module attributes {stable_mosaic.version = 11 : i64} {
  func.func @_wcel_kernel(%arg0: i32, %arg1: i32, %arg2: memref<16x128xf32, #tpu.memory_space<vmem>>, %arg3: memref<16x128xf32, #tpu.memory_space<vmem>>, %arg4: memref<16x1xi32, #tpu.memory_space<vmem>>, %arg5: memref<8x128xf32, #tpu.memory_space<vmem>>) attributes {dimension_semantics = [#tpu.dimension_semantics<parallel>, #tpu.dimension_semantics<arbitrary>], iteration_bounds = array<i64: 1, 1>, scalar_prefetch = 0 : i64, scratch_operands = 0 : i64, tpu.core_type = #tpu.core_type<tc>, window_params = [{transform_indices = @transform_0, window_bounds = array<i64: 16, 128>}, {transform_indices = @transform_1, window_bounds = array<i64: 16, 128>}, {transform_indices = @transform_2, window_bounds = array<i64: 16, 1>}, {transform_indices = @transform_3, window_bounds = array<i64: 8, 128>}]} {
    %c0_i32 = arith.constant 0 : i32
    %0 = arith.cmpi eq, %arg1, %c0_i32 : i32
    %1 = arith.extui %0 : i1 to i32
    %c0_i32_0 = arith.constant 0 : i32
    %2 = arith.cmpi ne, %1, %c0_i32_0 : i32
    scf.if %2 {
      %cst_30 = arith.constant 0.000000e+00 : f32
      %97 = vector.broadcast %cst_30 : f32 to vector<8x128xf32>
      %c0_31 = arith.constant 0 : index
      %c0_32 = arith.constant 0 : index
      %98 = vector.load %arg5[%c0_31, %c0_32] : memref<8x128xf32, #tpu.memory_space<vmem>>, vector<8x128xf32>
      tpu.vector_store %arg5[%c0_31, %c0_32], %97 {strides = array<i32>} : memref<8x128xf32, #tpu.memory_space<vmem>>, vector<8x128xf32>,
    } else {
    }
    %c1_i32 = arith.constant 1 : i32
    %3 = arith.muli %arg0, %c1_i32 : i32
    %4 = arith.addi %3, %arg1 : i32
    %c16_i32 = arith.constant 16 : i32
    %5 = arith.muli %4, %c16_i32 : i32
    %6 = tpu.iota {dimensions = array<i32: 0>} : vector<8x128xi32>
    %7 = tpu.iota {dimensions = array<i32: 0>} : vector<16x1xi32>
    %c0_i32_1 = arith.constant 0 : i32
    %c16_i32_2 = arith.constant 16 : i32
    %8 = arith.muli %c0_i32_1, %c16_i32_2 : i32
    %9 = tpu.assume_multiple %8, 16 : i32
    %10 = arith.index_cast %9 : i32 to index
    %c0 = arith.constant 0 : index
    %11 = vector.load %arg2[%10, %c0] : memref<16x128xf32, #tpu.memory_space<vmem>>, vector<16x128xf32>
    %12 = arith.index_cast %9 : i32 to index
    %c0_3 = arith.constant 0 : index
    %13 = vector.load %arg3[%12, %c0_3] : memref<16x128xf32, #tpu.memory_space<vmem>>, vector<16x128xf32>
    %14 = arith.mulf %11, %13 : vector<16x128xf32>
    %cst = arith.constant dense<0.000000e+00> : vector<16xf32>
    %15 = vector.multi_reduction <add>, %14, %cst [1] : vector<16x128xf32> to vector<16xf32>
    %16 = vector.shape_cast %15 : vector<16xf32> to vector<16x1xf32>
    %17 = arith.mulf %11, %11 : vector<16x128xf32>
    %cst_4 = arith.constant dense<0.000000e+00> : vector<16xf32>
    %18 = vector.multi_reduction <add>, %17, %cst_4 [1] : vector<16x128xf32> to vector<16xf32>
    %19 = vector.shape_cast %18 : vector<16xf32> to vector<16x1xf32>
    %20 = arith.mulf %13, %13 : vector<16x128xf32>
    %cst_5 = arith.constant dense<0.000000e+00> : vector<16xf32>
    %21 = vector.multi_reduction <add>, %20, %cst_5 [1] : vector<16x128xf32> to vector<16xf32>
    %22 = vector.shape_cast %21 : vector<16xf32> to vector<16x1xf32>
    %23 = arith.mulf %19, %22 : vector<16x1xf32>
    %cst_6 = arith.constant 1.000000e-16 : f32
    %24 = vector.broadcast %cst_6 : f32 to vector<16x1xf32>
    %25 = arith.maximumf %23, %24 : vector<16x1xf32>
    %26 = math.rsqrt %25 : vector<16x1xf32>
    %27 = arith.mulf %16, %26 : vector<16x1xf32>
    %28 = arith.index_cast %9 : i32 to index
    %c0_7 = arith.constant 0 : index
    %29 = vector.load %arg4[%28, %c0_7] : memref<16x1xi32, #tpu.memory_space<vmem>>, vector<16x1xi32>
    %30 = arith.addi %5, %9 : i32
    %31 = vector.broadcast %30 : i32 to vector<16x1xi32>
    %32 = arith.addi %31, %7 : vector<16x1xi32>
    %c16_i32_8 = arith.constant 16 : i32
    %33 = vector.broadcast %c16_i32_8 : i32 to vector<16x1xi32>
    %34 = arith.cmpi slt, %32, %33 : vector<16x1xi32>
    %c1_i32_9 = arith.constant 1 : i32
    %35 = vector.broadcast %c1_i32_9 : i32 to vector<16x1xi32>
    %36 = arith.cmpi eq, %29, %35 : vector<16x1xi32>
    %37 = arith.andi %34, %36 : vector<16x1xi1>
    %c-1_i32 = arith.constant -1 : i32
    %38 = vector.broadcast %c-1_i32 : i32 to vector<16x1xi32>
    %39 = arith.cmpi eq, %29, %38 : vector<16x1xi32>
    %40 = arith.andi %34, %39 : vector<16x1xi1>
    %cst_10 = arith.constant 1.000000e+00 : f32
    %41 = vector.broadcast %cst_10 : f32 to vector<16x1xf32>
    %42 = arith.subf %41, %27 : vector<16x1xf32>
    %cst_11 = arith.constant 0.000000e+00 : f32
    %43 = vector.broadcast %cst_11 : f32 to vector<16x1xf32>
    %44 = arith.select %37, %42, %43 : vector<16x1xi1>, vector<16x1xf32>
    %cst_12 = arith.constant 5.000000e-01 : f32
    %45 = vector.broadcast %cst_12 : f32 to vector<16x1xf32>
    %46 = arith.subf %27, %45 : vector<16x1xf32>
    %cst_13 = arith.constant 0.000000e+00 : f32
    %47 = vector.broadcast %cst_13 : f32 to vector<16x1xf32>
    %48 = arith.maximumf %46, %47 : vector<16x1xf32>
    %cst_14 = arith.constant 0.000000e+00 : f32
    %49 = vector.broadcast %cst_14 : f32 to vector<16x1xf32>
    %50 = arith.select %40, %48, %49 : vector<16x1xi1>, vector<16x1xf32>
    %51 = vector.shape_cast %44 : vector<16x1xf32> to vector<1x16x1xf32>
    %cst_15 = arith.constant dense<0.000000e+00> : vector<1xf32>
    %52 = vector.multi_reduction <add>, %51, %cst_15 [1, 2] : vector<1x16x1xf32> to vector<1xf32>
    %53 = vector.shape_cast %52 : vector<1xf32> to vector<1x1x1xf32>
    %54 = vector.extract %53[0, 0, 0] : f32 from vector<1x1x1xf32>
    %55 = arith.extui %37 : vector<16x1xi1> to vector<16x1xi32>
    %56 = arith.sitofp %55 : vector<16x1xi32> to vector<16x1xf32>
    %57 = vector.shape_cast %56 : vector<16x1xf32> to vector<1x16x1xf32>
    %cst_16 = arith.constant dense<0.000000e+00> : vector<1xf32>
    %58 = vector.multi_reduction <add>, %57, %cst_16 [1, 2] : vector<1x16x1xf32> to vector<1xf32>
    %59 = vector.shape_cast %58 : vector<1xf32> to vector<1x1x1xf32>
    %60 = vector.extract %59[0, 0, 0] : f32 from vector<1x1x1xf32>
    %61 = vector.shape_cast %50 : vector<16x1xf32> to vector<1x16x1xf32>
    %cst_17 = arith.constant dense<0.000000e+00> : vector<1xf32>
    %62 = vector.multi_reduction <add>, %61, %cst_17 [1, 2] : vector<1x16x1xf32> to vector<1xf32>
    %63 = vector.shape_cast %62 : vector<1xf32> to vector<1x1x1xf32>
    %64 = vector.extract %63[0, 0, 0] : f32 from vector<1x1x1xf32>
    %65 = arith.extui %40 : vector<16x1xi1> to vector<16x1xi32>
    %66 = arith.sitofp %65 : vector<16x1xi32> to vector<16x1xf32>
    %67 = vector.shape_cast %66 : vector<16x1xf32> to vector<1x16x1xf32>
    %cst_18 = arith.constant dense<0.000000e+00> : vector<1xf32>
    %68 = vector.multi_reduction <add>, %67, %cst_18 [1, 2] : vector<1x16x1xf32> to vector<1xf32>
    %69 = vector.shape_cast %68 : vector<1xf32> to vector<1x1x1xf32>
    %70 = vector.extract %69[0, 0, 0] : f32 from vector<1x1x1xf32>
    %c0_19 = arith.constant 0 : index
    %c0_20 = arith.constant 0 : index
    %71 = vector.load %arg5[%c0_19, %c0_20] : memref<8x128xf32, #tpu.memory_space<vmem>>, vector<8x128xf32>
    %c0_i32_21 = arith.constant 0 : i32
    %72 = vector.broadcast %c0_i32_21 : i32 to vector<8x128xi32>
    %73 = arith.cmpi eq, %6, %72 : vector<8x128xi32>
    %cst_22 = arith.constant 0.000000e+00 : f32
    %74 = vector.broadcast %54 : f32 to vector<8x128xf32>
    %75 = vector.broadcast %cst_22 : f32 to vector<8x128xf32>
    %76 = arith.select %73, %74, %75 : vector<8x128xi1>, vector<8x128xf32>
    %c1_i32_23 = arith.constant 1 : i32
    %77 = vector.broadcast %c1_i32_23 : i32 to vector<8x128xi32>
    %78 = arith.cmpi eq, %6, %77 : vector<8x128xi32>
    %cst_24 = arith.constant 0.000000e+00 : f32
    %79 = vector.broadcast %60 : f32 to vector<8x128xf32>
    %80 = vector.broadcast %cst_24 : f32 to vector<8x128xf32>
    %81 = arith.select %78, %79, %80 : vector<8x128xi1>, vector<8x128xf32>
    %82 = arith.addf %76, %81 : vector<8x128xf32>
    %c2_i32 = arith.constant 2 : i32
    %83 = vector.broadcast %c2_i32 : i32 to vector<8x128xi32>
    %84 = arith.cmpi eq, %6, %83 : vector<8x128xi32>
    %cst_25 = arith.constant 0.000000e+00 : f32
    %85 = vector.broadcast %64 : f32 to vector<8x128xf32>
    %86 = vector.broadcast %cst_25 : f32 to vector<8x128xf32>
    %87 = arith.select %84, %85, %86 : vector<8x128xi1>, vector<8x128xf32>
    %88 = arith.addf %82, %87 : vector<8x128xf32>
    %c3_i32 = arith.constant 3 : i32
    %89 = vector.broadcast %c3_i32 : i32 to vector<8x128xi32>
    %90 = arith.cmpi eq, %6, %89 : vector<8x128xi32>
    %cst_26 = arith.constant 0.000000e+00 : f32
    %91 = vector.broadcast %70 : f32 to vector<8x128xf32>
    %92 = vector.broadcast %cst_26 : f32 to vector<8x128xf32>
    %93 = arith.select %90, %91, %92 : vector<8x128xi1>, vector<8x128xf32>
    %94 = arith.addf %88, %93 : vector<8x128xf32>
    %95 = arith.addf %71, %94 : vector<8x128xf32>
    %c0_27 = arith.constant 0 : index
    %c0_28 = arith.constant 0 : index
    %96 = vector.load %arg5[%c0_27, %c0_28] : memref<8x128xf32, #tpu.memory_space<vmem>>, vector<8x128xf32>
    tpu.vector_store %arg5[%c0_27, %c0_28], %95 {strides = array<i32>} : memref<8x128xf32, #tpu.memory_space<vmem>>, vector<8x128xf32>,
    %c1_i32_29 = arith.constant 1 : i32
    return
  }
  func.func @transform_0(%arg0: i32, %arg1: i32) -> (i32, i32) {
    %c1_i32 = arith.constant 1 : i32
    %0 = arith.muli %arg0, %c1_i32 : i32
    %1 = arith.addi %0, %arg1 : i32
    %c0_i32 = arith.constant 0 : i32
    %c0_i32_0 = arith.constant 0 : i32
    return %1, %c0_i32 : i32, i32
  }
  func.func @transform_1(%arg0: i32, %arg1: i32) -> (i32, i32) {
    %c1_i32 = arith.constant 1 : i32
    %0 = arith.muli %arg0, %c1_i32 : i32
    %1 = arith.addi %0, %arg1 : i32
    %c0_i32 = arith.constant 0 : i32
    %c0_i32_0 = arith.constant 0 : i32
    return %1, %c0_i32 : i32, i32
  }
  func.func @transform_2(%arg0: i32, %arg1: i32) -> (i32, i32) {
    %c1_i32 = arith.constant 1 : i32
    %0 = arith.muli %arg0, %c1_i32 : i32
    %1 = arith.addi %0, %arg1 : i32
    %c0_i32 = arith.constant 0 : i32
    %c0_i32_0 = arith.constant 0 : i32
    return %1, %c0_i32 : i32, i32
  }
  func.func @transform_3(%arg0: i32, %arg1: i32) -> (i32, i32) {
    %c0_i32 = arith.constant 0 : i32
    %c0_i32_0 = arith.constant 0 : i32
    return %arg0, %c0_i32 : i32, i32
  }
}

</mosaic_0001>

<bundles_post_ra>
// kernel: tpu_custom_call.1
= control target key start
LH: loop header
LB: loop body
LE: loop exit
PB: predicated region body
PF: predicated region fallthrough
CT: control target
= control target key end

     0   :  { %8 = vsyncpa [#allocation3], 0  ;;  %s399_s0 = inlined_call_operand.vmem [shape: f32[16,128], index: 0, kind: input, shape index: {}]   ;;  %s400_s1 = inlined_call_operand.hbm [shape: f32[16,128], index: 1, kind: input, shape index: {}]   ;;  %s401_s2 = inlined_call_operand.vmem [shape: s32[16,1], index: 2, kind: input, shape index: {}]   ;;  %s402_s3 = inlined_call_operand.hbm [shape: f32[8,128], index: 3, kind: output, shape index: {}]  }
   0x1   :  { %9 = vsyncpa [#allocation4], 0  ;;  %s28_s14 = sshll.u32 %s400_s1, 4  ;;  %s344_s15 = smov [#allocation2]   ;;  %s29_s14 = int_to_ptr.hbm [resolvable:$true] %s28_s14 }
   0x2   :  { %s30_s16 = sshll.u32 %s344_s15, 4  ;;  %s345_s17 = smov 128   ;;  %s31_s16 = int_to_ptr.vmem [resolvable:$true] %s30_s16 }
   0x3   :  { %s346_s18 = smov 8  }
   0x4   :  { %36 = dma.hbm_to_vmem [thread:$0]  %s29_s14, 256, %s31_s16, [#allocation3], %s345_s17, %s345_s17, %s346_s18  }
   0x5   :  { %340 = dma.done.wait [#allocation3], 256  }
   0x6   :  { %341 = vsyncadd [#allocation3], 4294967040  ;;  %v93_v0 = vld [vmem:[#allocation2] sm:$0xff]  ;;  %v94_v5 = vld [vmem:[#allocation2 + $0x8] sm:$0xff]  ;;  %vm165_vm2 = vcmask 7168   ;;  %v347_v15 = vmov 0.0  }
   0x7   :  { %v91_v1 = vld [vmem:[%s399_s0] sm:$0xff]  ;;  %v107_v2 = vmul.f32 %v93_v0, %v93_v0  ;;  %v92_v6 = vld [vmem:[%s399_s0 + $0x8] sm:$0xff]  ;;  %v108_v7 = vmul.f32 %v94_v5, %v94_v5  ;;  %s348_s28 = smov [#allocation5]   ;;  %s247_s5 = sshll.u32 %s402_s3, 4  ;;  %s248_s5 = int_to_ptr.hbm [resolvable:$true] %s247_s5 }
   0x8   :  { %v101_v3 = vmul.f32 %v91_v1, %v91_v1  ;;  %v95_v4 = vmul.f32 %v93_v0, %v91_v1  ;;  %v102_v8 = vmul.f32 %v92_v6, %v92_v6  ;;  %v96_v9 = vmul.f32 %v94_v5, %v92_v6  ;;  %v139_v10 = vld [vmem:[%s401_s2] sm:$0xff]  ;;  %v140_v11 = vld [vmem:[%s401_s2 + $0x8] sm:$0xff]  ;;  %s245_s29 = sshll.u32 %s348_s28, 4  ;;  %s246_s29 = int_to_ptr.vmem [resolvable:$true] %s245_s29 }
   0x9   :  { %109 = vadd.xlane.f32.xlu1 %v107_v2  ;;  %vm147_vm0 = vcmp.eq.s32.totalorder %v139_v10, 1  ;;  %vm148_vm1 = vcmp.eq.s32.totalorder %v140_v11, 1  ;;  %vm151_vm9 = vcmp.eq.s32.totalorder %v139_v10, 4294967295  ;;  %vm152_vm10 = vcmp.eq.s32.totalorder %v140_v11, 4294967295 }
   0xa   :  { %103 = vadd.xlane.f32.xlu0 %v101_v3  ;;  %97 = vadd.xlane.f32.xlu2 %v95_v4  ;;  %v271_v16 = vsel %vm147_vm0, 1.0, %v347_v15  ;;  %v272_v17 = vsel %vm148_vm1, 1.0, %v347_v15  ;;  %v273_v57 = vsel %vm151_vm9, 1.0, %v347_v15  ;;  %v274_v58 = vsel %vm152_vm10, 1.0, %v347_v15 }
   0xb   :  { %v182_v18 = vsel %vm165_vm2, %v271_v16, 0.0  ;;  %v183_v19 = vsel %vm165_vm2, %v272_v17, 0.0  ;;  %v210_v62 = vsel %vm165_vm2, %v273_v57, 0.0  ;;  %v211_v63 = vsel %vm165_vm2, %v274_v58, 0.0 }
   0xc   :  { %v184_v21 = vadd.f32 %v183_v19, %v182_v18  ;;  %v212_v0 = vadd.f32 %v211_v63, %v210_v62 }
  0x11   :  { %111 = vadd.xlane.f32.xlu1 %v108_v7 }
  0x12   :  { %105 = vadd.xlane.f32.xlu0 %v102_v8  ;;  %99 = vadd.xlane.f32.xlu2 %v96_v9 }
  0x19   :  { %185 = vadd.xlane.f32.xlu1 %v184_v21 }
  0x7c   :  { %v110_v12 = vpop.xlane.xlu1 %109 }
  0x7d   :  { %v104_v13 = vpop.xlane.xlu0 %103  ;;  %v98_v31 = vpop.xlane.xlu2 %97 }
  0x7e   :  { %v113_v14 = vmul.f32 %v110_v12, %v104_v13 }
  0x80   :  { %v115_v20 = vmax.f32 %v113_v14, 1e-16 }
  0x82   :  { %288 = vrsqrt.f32 %v115_v20  ;;  %vm123_vm4 = vweird.f32 %v115_v20 }
  0x84   :  { %v112_v22 = vpop.xlane.xlu1 %111 }
  0x85   :  { %v106_v23 = vpop.xlane.xlu0 %105  ;;  %v100_v42 = vpop.xlane.xlu2 %99 }
  0x86   :  { %v114_v24 = vmul.f32 %v112_v22, %v106_v23 }
  0x88   :  { %v289_v25 = vpop.eup %288  ;;  %v116_v26 = vmax.f32 %v114_v24, 1e-16 }
  0x89   :  { %v118_v27 = vmul.f32 %v289_v25, %v115_v20  ;;  %vm124_vm3 = vweird.f32 %v289_v25 }
  0x8a   :  { %290 = vrsqrt.f32 %v116_v26  ;;  %vm125_vm5 = vmor %vm123_vm4, %vm124_vm3  ;;  %vm133_vm7 = vweird.f32 %v116_v26 }
  0x8b   :  { %v119_v28 = vmul.f32 %v289_v25, %v118_v27 }
  0x8c   :  { %v186_v1 = vpop.xlane.xlu1 %185 }
  0x8d   :  { %v120_v29 = vmul.f32 0.5, %v119_v28  ;;  %v187_v2 = vrot.slane %v186_v1, 4 }
  0x8f   :  { %v121_v30 = vsub.f32 1.5, %v120_v29  ;;  %v188_v3 = vadd.f32 %v187_v2, %v186_v1  ;;  %v88_v29 = vlaneseq }
  0x90   :  { %v291_v32 = vpop.eup %290 }
  0x91   :  { %v128_v33 = vmul.f32 %v291_v32, %v116_v26  ;;  %v122_v34 = vmul.f32 %v289_v25, %v121_v30  ;;  %vm134_vm6 = vweird.f32 %v291_v32  ;;  %v189_v4 = vrot.slane %v188_v3, 2 }
  0x92   :  { %vm135_vm8 = vmor %vm133_vm7, %vm134_vm6  ;;  %v89_v30 = vshrl.u32 %v88_v29, 7 }
  0x93   :  { %v129_v35 = vmul.f32 %v291_v32, %v128_v33  ;;  %v126_v36 = vsel %vm125_vm5, %v289_v25, %v122_v34  ;;  %v190_v10 = vadd.f32 %v189_v4, %v188_v3 }
  0x94   :  { %v137_v37 = vmul.f32 %v126_v36, %v98_v31  ;;  %vm223_vm11 = vcmp.eq.s32.totalorder %v89_v30, 0  ;;  %vm226_vm12 = vcmp.eq.s32.totalorder %v89_v30, 1  ;;  %vm230_vm13 = vcmp.eq.s32.totalorder %v89_v30, 2 }
  0x95   :  { %v130_v38 = vmul.f32 0.5, %v129_v35  ;;  %v191_v16 = vrot.slane %v190_v10, 1  ;;  %vm234_vm14 = vcmp.eq.s32.totalorder %v89_v30, 3 }
  0x96   :  { %v269_v40 = vadd.f32 -0.5, %v137_v37  ;;  %v155_v43 = vsub.f32 1.0, %v137_v37 }
  0x97   :  { %v131_v39 = vsub.f32 1.5, %v130_v38  ;;  %v192_v23 = vadd.f32 %v191_v16, %v190_v10 }
  0x98   :  { %v161_v45 = vmax.f32 %v269_v40, 0.0  ;;  %v157_v49 = vsel %vm147_vm0, %v155_v43, 0.0 }
  0x99   :  { %v132_v41 = vmul.f32 %v291_v32, %v131_v39  ;;  %v166_v53 = vsel %vm165_vm2, %v157_v49, 0.0 }
  0x9a   :  { %v163_v52 = vsel %vm151_vm9, %v161_v45, 0.0 }
  0x9b   :  { %v136_v44 = vsel %vm135_vm8, %v291_v32, %v132_v41  ;;  %v194_v59 = vsel %vm165_vm2, %v163_v52, 0.0 }
  0x9c   :  { %v138_v46 = vmul.f32 %v136_v44, %v100_v42 }
  0x9e   :  { %v156_v47 = vsub.f32 1.0, %v138_v46  ;;  %v270_v48 = vadd.f32 -0.5, %v138_v46 }
  0xa0   :  { %v162_v50 = vmax.f32 %v270_v48, 0.0  ;;  %v158_v51 = vsel %vm148_vm1, %v156_v47, 0.0 }
  0xa1   :  { %v167_v54 = vsel %vm165_vm2, %v158_v51, 0.0 }
  0xa2   :  { %v168_v55 = vadd.f32 %v167_v54, %v166_v53  ;;  %v164_v56 = vsel %vm152_vm10, %v162_v50, 0.0 }
  0xa3   :  { %v195_v60 = vsel %vm165_vm2, %v164_v56, 0.0 }
  0xa4   :  { %169 = vadd.xlane.f32.xlu0 %v168_v55  ;;  %v196_v61 = vadd.f32 %v195_v60, %v194_v59 }
  0xa6   :  { %197 = vadd.xlane.f32.xlu2 %v196_v61 }
  0xac   :  { %213 = vadd.xlane.f32.xlu0 %v212_v0 }
 0x117   :  { %v170_v5 = vpop.xlane.xlu0 %169 }
 0x118   :  { %v171_v6 = vrot.slane %v170_v5, 4 }
 0x119   :  { %v198_v7 = vpop.xlane.xlu2 %197 }
 0x11a   :  { %v172_v8 = vadd.f32 %v171_v6, %v170_v5  ;;  %v199_v9 = vrot.slane %v198_v7, 4 }
 0x11c   :  { %v173_v11 = vrot.slane %v172_v8, 2  ;;  %v200_v12 = vadd.f32 %v199_v9, %v198_v7 }
 0x11e   :  { %v201_v13 = vrot.slane %v200_v12, 2  ;;  %v174_v14 = vadd.f32 %v173_v11, %v172_v8 }
 0x11f   :  { %v214_v15 = vpop.xlane.xlu0 %213 }
 0x120   :  { %v202_v17 = vadd.f32 %v201_v13, %v200_v12  ;;  %v215_v18 = vrot.slane %v214_v15, 4  ;;  %v175_v19 = vrot.slane %v174_v14, 1 }
 0x122   :  { %v216_v20 = vadd.f32 %v215_v18, %v214_v15  ;;  %v176_v21 = vadd.f32 %v175_v19, %v174_v14  ;;  %v203_v22 = vrot.slane %v202_v17, 1 }
 0x124   :  { %v217_v24 = vrot.slane %v216_v20, 2  ;;  %275 = vpush %v176_v21  ;;  %v204_v25 = vadd.f32 %v203_v22, %v202_v17 }
 0x125   :  { %277 = vpush %v192_v23 }
 0x126   :  { %v218_v26 = vadd.f32 %v217_v24, %v216_v20  ;;  %279 = vpush %v204_v25 }
 0x128   :  { %v219_v27 = vrot.slane %v218_v26, 1 }
 0x12a   :  { %v220_v28 = vadd.f32 %v219_v27, %v218_v26 }
 0x12c   :  { %281 = vpush %v220_v28 }
 0x155   :  { %s276_s0 = spop %275 }
 0x156   :  { %v224_v31 = vstv %s276_s0  ;;  %s278_s2 = spop %277 }
 0x157   :  { %v225_v32 = vsel %vm223_vm11, %v224_v31, 0.0  ;;  %v227_v33 = vstv %s278_s2  ;;  %s280_s26 = spop %279 }
 0x158   :  { %v228_v34 = vsel %vm226_vm12, %v227_v33, 0.0  ;;  %v231_v35 = vstv %s280_s26 }
 0x159   :  { %v229_v36 = vadd.f32 %v228_v34, %v225_v32  ;;  %v232_v37 = vsel %vm230_vm13, %v231_v35, 0.0 }
 0x15b   :  { %v233_v38 = vadd.f32 %v232_v37, %v229_v36 }
 0x15d   :  { %s282_s27 = spop %281 }
 0x15e   :  { %v235_v39 = vstv %s282_s27 }
 0x15f   :  { %v236_v40 = vsel %vm234_vm14, %v235_v39, 0.0 }
 0x160   :  { %v237_v41 = vadd.f32 %v236_v40, %v233_v38 }
 0x162   :  { %239 = vst [vmem:[#allocation5] sm:$0xff] %v237_v41 }
 0x163   :  { %250 = dma.vmem_to_hbm [thread:$0]  %s246_s29, 128, %s248_s5, [#allocation4]  }
 0x164   :  { %342 = dma.done.wait [#allocation4], 128  }
 0x165   :  { %343 = vsyncadd [#allocation4], 4294967168 }
 0x166   :  { %255 = vsyncpa [#allocation3], 1 }
 0x167   :  { %256 = vsyncpa [#allocation4], 1 }

</bundles_post_ra>
